<compile_context>
chip_gen: v7x
topology: tpu7x:2x2x1
jax: 0.10.0
libtpu: 0.0.40
codegen_flags: <defaults>
</compile_context>

<pallas_src>
from functools import partial

import jax
import jax.numpy as jnp
from jax.experimental import pallas as pl
from jax.experimental.pallas import tpu as pltpu


# ---------------------------------------------------------------------------
# Aligned path: split-K over fold-sized channel blocks (innermost grid axis).
# ---------------------------------------------------------------------------
def _shift_splitk_kernel(x_ref, w_ref, b_ref, o_ref, acc_ref, *,
                         fold, whole_weight):
    t = pl.program_id(1)
    k = pl.program_id(3)
    n_seg = pl.num_programs(1)
    nk = pl.num_programs(3)

    @pl.when(k == 0)
    def _init():
        acc_ref[...] = jnp.zeros_like(acc_ref)

    # Output channel-block 0 comes from frame t+1 (zero at t == T-1), block 1
    # from frame t-1 (zero at t == 0), blocks >= 2 from frame t.  The temporal
    # zero padding is implemented by skipping the matmul contribution.
    skip = jnp.logical_or(jnp.logical_and(k == 0, t == n_seg - 1),
                          jnp.logical_and(k == 1, t == 0))

    @pl.when(jnp.logical_not(skip))
    def _accumulate():
        x = x_ref[...]                                   # (b_tile, p, fold) bf16
        rows = x.shape[0] * x.shape[1]
        x2 = x.reshape(rows, x.shape[2])
        if whole_weight:
            # Whole weight resident in VMEM: slice the fold-row strip in-kernel
            # (128-lane-aligned sublane offset).
            off = pl.multiple_of(k * fold, 128)
            w = w_ref[pl.ds(off, fold), :]
        else:
            w = w_ref[...]                               # (fold, TILE_N) block
        acc_ref[...] += jnp.dot(x2, w, preferred_element_type=jnp.float32)

    @pl.when(k == nk - 1)
    def _store():
        y = acc_ref[...] + b_ref[...]                    # f32 bias add
        o_ref[...] = y.reshape(o_ref.shape).astype(o_ref.dtype)


# ---------------------------------------------------------------------------
# Fallback path (non-128-aligned fold): correctness-oriented, full-width tiles.
# ---------------------------------------------------------------------------
def _shift_where_kernel(prv_ref, cur_ref, nxt_ref, w_ref, b_ref, o_ref, *, fold):
    t = pl.program_id(1)
    n_seg = pl.num_programs(1)
    c = cur_ref.shape[-1]
    cur = cur_ref[...].reshape(-1, c)
    rows = cur.shape[0]
    nxt = nxt_ref[...].reshape(rows, c)
    prv = prv_ref[...].reshape(rows, c)

    zeros = jnp.zeros_like(cur)
    nxt = jnp.where(t < n_seg - 1, nxt, zeros)   # temporal zero pad at t == T-1
    prv = jnp.where(t > 0, prv, zeros)           # temporal zero pad at t == 0

    ch = jax.lax.broadcasted_iota(jnp.int32, (rows, c), 1)
    shifted = jnp.where(ch < fold, nxt, jnp.where(ch < 2 * fold, prv, cur))

    y = jnp.dot(shifted, w_ref[...], preferred_element_type=jnp.float32)
    y = y + b_ref[...]
    o_ref[...] = y.reshape(o_ref.shape).astype(o_ref.dtype)


# ---------------------------------------------------------------------------
# Sizing helpers.
# ---------------------------------------------------------------------------
def _vmem_budget():
    capacity = 64 << 20                       # conservative default (v7x)
    try:
        capacity = int(pltpu.get_tpu_info().vmem_capacity_bytes)
    except Exception:
        pass
    budget = int(capacity * 0.7)
    target_rows = 1024 if capacity >= (100 << 20) else 512
    return budget, target_rows


def _pick_b_tile(n_batch, p, target_rows):
    # TODO(synk): pad p up to a multiple of 16 (bf16 sublane packing) so row
    # merging works for ragged spatial sizes; those shapes currently fall back
    # to b_tile = 1.
    if p % 16 != 0:
        return 1
    best = 1
    best_balanced = 1
    for bt in range(1, n_batch + 1):
        if n_batch % bt == 0 and bt * p <= max(target_rows, p):
            best = bt
            if n_batch // bt >= 2:
                best_balanced = bt
    # Prefer >= 2 batch tiles (megacore balance on v7x) when rows stay filled.
    if best_balanced * p >= min(256, best * p):
        return best_balanced
    return best


def _est_aligned(rows, fold, tile_n, c_in, c_out, whole_weight, out_itemsize):
    est = (2 * rows * fold * 2                 # double-buffered x blocks (bf16)
           + 2 * rows * tile_n * out_itemsize  # double-buffered out blocks
           + 2 * rows * tile_n * 4             # f32 accumulator + matmul result
           + (2 << 20))                        # compiler-scratch slack
    if whole_weight:
        est += c_in * c_out * 2 + c_out * 4
    else:
        est += 2 * (fold * tile_n * 2 + tile_n * 4)
    return est


def _pick_tile_n(c_out, rows, fold, c_in, out_itemsize, budget):
    cands = [c_out]
    for m in (2048, 1024, 512, 256, 128):
        if m < c_out and c_out % m == 0:
            cands.append(m)
    for tn in cands:
        if _est_aligned(rows, fold, tn, c_in, c_out, False, out_itemsize) <= budget:
            return tn
    return cands[-1]


# ---------------------------------------------------------------------------
# Wrappers.
# ---------------------------------------------------------------------------
def _forward_aligned(x4, w_lp, b_f32, out_dtype, *, n_segment, fold, b_tile,
                     budget, force_weight_streaming, tile_n):
    n_batch, _, p, c = x4.shape
    c_out = w_lp.shape[1]
    rows = b_tile * p
    nk = c // fold
    out_itemsize = jnp.dtype(out_dtype).itemsize

    weight_bytes = c * c_out * 2 + c_out * 4
    whole_weight = (not force_weight_streaming) and weight_bytes <= budget * 2 // 5

    if whole_weight:
        tn = c_out
    elif tile_n is not None:
        tn = tile_n
    else:
        tn = _pick_tile_n(c_out, rows, fold, c, out_itemsize, budget)
    assert c_out % tn == 0
    n_tiles = c_out // tn

    est = _est_aligned(rows, fold, tn, c, c_out, whole_weight, out_itemsize)

    # Grid: (batch tiles, segments, output-channel tiles, channel blocks).
    # The channel-block (reduction) axis is innermost so a single f32 scratch
    # accumulator covers it; activations are re-read only when n_tiles > 1,
    # i.e. only when the streamed weight already dominates HBM traffic.
    grid = (n_batch // b_tile, n_segment, n_tiles, nk)

    def x_index(b, t, n, k):
        seg = jnp.clip(
            t + (k == 0).astype(jnp.int32) - (k == 1).astype(jnp.int32),
            0, n_segment - 1)
        return (b, seg, 0, k)

    in_specs = [pl.BlockSpec((b_tile, None, p, fold), x_index)]
    if whole_weight:
        # Constant across the grid: one resident VMEM copy, no per-step re-DMA.
        in_specs += [pl.BlockSpec(memory_space=pltpu.MemorySpace.VMEM),
                     pl.BlockSpec(memory_space=pltpu.MemorySpace.VMEM)]
    else:
        in_specs += [pl.BlockSpec((fold, tn), lambda b, t, n, k: (k, n)),
                     pl.BlockSpec((1, tn), lambda b, t, n, k: (0, n))]

    out_spec = pl.BlockSpec((b_tile, None, p, tn),
                            lambda b, t, n, k: (b, t, 0, n))

    cp = dict(dimension_semantics=("parallel", "parallel",
                                   "arbitrary", "arbitrary"))
    if est > (12 << 20):
        cp["vmem_limit_bytes"] = int(min(max(est * 5 // 4, 32 << 20), budget))

    out4 = pl.pallas_call(
        partial(_shift_splitk_kernel, fold=fold, whole_weight=whole_weight),
        out_shape=jax.ShapeDtypeStruct((n_batch, n_segment, p, c_out), out_dtype),
        grid=grid,
        in_specs=in_specs,
        out_specs=out_spec,
        scratch_shapes=[pltpu.VMEM((rows, tn), jnp.float32)],
        compiler_params=pltpu.CompilerParams(**cp),
    )(x4, w_lp, b_f32)
    return out4.reshape(n_batch * n_segment, p, c_out)


def _forward_fallback(x4, w_lp, b_f32, out_dtype, *, n_segment, fold, b_tile,
                      budget):
    n_batch, _, p, c = x4.shape
    c_out = w_lp.shape[1]
    rows = b_tile * p
    out_itemsize = jnp.dtype(out_dtype).itemsize

    grid = (n_batch // b_tile, n_segment)
    frame = (b_tile, None, p, c)

    est = (3 * 2 * rows * c * 2 + 2 * rows * c_out * out_itemsize
           + rows * c * 2 + rows * c_out * 4
           + c * c_out * 2 + c_out * 4 + (2 << 20))

    cp = dict(dimension_semantics=("parallel", "parallel"))
    if est > (12 << 20):
        cp["vmem_limit_bytes"] = int(min(max(est * 5 // 4, 32 << 20), budget))

    # Note: for c (or c_out) not a multiple of 128 the output stores are masked
    # partial stores; production shapes should pad channels to 128.
    out4 = pl.pallas_call(
        partial(_shift_where_kernel, fold=fold),
        out_shape=jax.ShapeDtypeStruct((n_batch, n_segment, p, c_out), out_dtype),
        grid=grid,
        in_specs=[
            pl.BlockSpec(frame, lambda b, t: (b, jnp.maximum(t - 1, 0), 0, 0)),
            pl.BlockSpec(frame, lambda b, t: (b, t, 0, 0)),
            pl.BlockSpec(frame,
                         lambda b, t: (b, jnp.minimum(t + 1, n_segment - 1), 0, 0)),
            pl.BlockSpec(memory_space=pltpu.MemorySpace.VMEM),
            pl.BlockSpec(memory_space=pltpu.MemorySpace.VMEM),
        ],
        out_specs=pl.BlockSpec((b_tile, None, p, c_out),
                               lambda b, t: (b, t, 0, 0)),
        compiler_params=pltpu.CompilerParams(**cp),
    )(x4, x4, x4, w_lp, b_f32)
    return out4.reshape(n_batch * n_segment, p, c_out)


def temporal_shift_forward(x, w, bias, *, n_segment=3, fold_div=8,
                           out_dtype=None, force_weight_streaming=False,
                           tile_n=None):
    """Fused TemporalShift.shift + Linear.

    x:    (nt, p, c_in), nt = n_batch * n_segment.
    w:    (c_in, c_out) laid out for `x @ w` (pass PyTorch weight.T).
    bias: (c_out,) or (1, c_out).
    """
    nt, p, c = x.shape
    assert nt % n_segment == 0, "nt must be divisible by n_segment"
    n_batch = nt // n_segment
    c_in, c_out = w.shape
    assert c_in == c
    fold = c // fold_div
    assert fold > 0
    out_dtype = x.dtype if out_dtype is None else out_dtype

    x4 = x.reshape(n_batch, n_segment, p, c).astype(jnp.bfloat16)
    w_lp = w.astype(jnp.bfloat16)
    b_f32 = bias.reshape(1, c_out).astype(jnp.float32)

    budget, target_rows = _vmem_budget()
    b_tile = _pick_b_tile(n_batch, p, target_rows)

    aligned = (fold % 128 == 0) and (c % fold == 0)
    if aligned:
        return _forward_aligned(x4, w_lp, b_f32, out_dtype,
                                n_segment=n_segment, fold=fold, b_tile=b_tile,
                                budget=budget,
                                force_weight_streaming=force_weight_streaming,
                                tile_n=tile_n)
    return _forward_fallback(x4, w_lp, b_f32, out_dtype,
                             n_segment=n_segment, fold=fold, b_tile=b_tile,
                             budget=budget)


def reference_forward(x, w, bias, *, n_segment=3, fold_div=8):
    """Pure-JAX transcription of TemporalShift.shift + Linear (bf16 matmul)."""
    nt, p, c = x.shape
    n_batch = nt // n_segment
    fold = c // fold_div
    x4 = x.reshape(n_batch, n_segment, p, c)
    out = jnp.zeros_like(x4)
    out = out.at[:, :-1, :, :fold].set(x4[:, 1:, :, :fold])
    out = out.at[:, 1:, :, fold:2 * fold].set(x4[:, :-1, :, fold:2 * fold])
    out = out.at[:, :, :, 2 * fold:].set(x4[:, :, :, 2 * fold:])
    shifted = out.reshape(nt, p, c)
    y = jnp.dot(shifted.astype(jnp.bfloat16), w.astype(jnp.bfloat16),
                preferred_element_type=jnp.float32)
    return (y + bias.reshape(1, -1).astype(jnp.float32)).astype(x.dtype)


if __name__ == "__main__":
    key = jax.random.PRNGKey(0)

    def run_case(n_batch, n_segment, p, c, fold_div, case_key, **kwargs):
        kx, kwt, kb = jax.random.split(case_key, 3)
        nt = n_batch * n_segment
        x = jax.random.normal(kx, (nt, p, c), dtype=jnp.float32)
        # Deterministic Linear(c, c) params for `net`, stored as (c_in, c_out).
        w = jax.random.normal(kwt, (c, c), dtype=jnp.float32) * 0.02
        b = jax.random.normal(kb, (c,), dtype=jnp.float32) * 0.02

        out = jax.block_until_ready(
            temporal_shift_forward(x, w, b, n_segment=n_segment,
                                   fold_div=fold_div, **kwargs))
        ref = reference_forward(x, w, b, n_segment=n_segment, fold_div=fold_div)
        assert out.shape == (nt, p, c)
        err = float(jnp.max(jnp.abs(out - ref)))
        assert jnp.allclose(out, ref, atol=1e-2, rtol=1e-2), err

    k1, k2, k3, k4 = jax.random.split(key, 4)
    # Unaligned fold (fold = 4): correctness fallback path.
    run_case(2, 3, 16, 32, 8, k1)
    # Lane-aligned fold (fold = 128): split-K channel-block path, resident weight.
    run_case(2, 3, 16, 512, 4, k2)
    # Same shape, forced weight streaming + output-channel tiling (v7x-style path).
    run_case(2, 3, 16, 512, 4, k3, force_weight_streaming=True, tile_n=256)
    # fold_div = 8: more 'keep' channel blocks in the split-K grid.
    run_case(2, 3, 16, 1024, 8, k4)

    print("KERNEL_OK")
</pallas_src>

<mosaic_0001>
module attributes {stable_mosaic.version = 11 : i64} {
  func.func @_shift_where_kernel(%arg0: i32, %arg1: i32, %arg2: memref<2x1x16x32xbf16, #tpu.memory_space<vmem>>, %arg3: memref<2x1x16x32xbf16, #tpu.memory_space<vmem>>, %arg4: memref<2x1x16x32xbf16, #tpu.memory_space<vmem>>, %arg5: memref<32x32xbf16, #tpu.memory_space<vmem>>, %arg6: memref<1x32xf32, #tpu.memory_space<vmem>>, %arg7: memref<2x1x16x32xf32, #tpu.memory_space<vmem>>) attributes {dimension_semantics = [#tpu.dimension_semantics<parallel>, #tpu.dimension_semantics<parallel>], iteration_bounds = array<i64: 1, 3>, scalar_prefetch = 0 : i64, scratch_operands = 0 : i64, tpu.core_type = #tpu.core_type<tc>, window_params = [{transform_indices = @transform_0, window_bounds = array<i64: 2, 1, 16, 32>}, {transform_indices = @transform_1, window_bounds = array<i64: 2, 1, 16, 32>}, {transform_indices = @transform_2, window_bounds = array<i64: 2, 1, 16, 32>}, {pipeline_mode = #tpu.pipeline_mode<synchronous>, transform_indices = @transform_3, window_bounds = array<i64: 32, 32>}, {pipeline_mode = #tpu.pipeline_mode<synchronous>, transform_indices = @transform_4, window_bounds = array<i64: 1, 32>}, {transform_indices = @transform_5, window_bounds = array<i64: 2, 1, 16, 32>}]} {
    %c0 = arith.constant 0 : index
    %c0_0 = arith.constant 0 : index
    %c0_1 = arith.constant 0 : index
    %c0_2 = arith.constant 0 : index
    %0 = vector.load %arg3[%c0, %c0_0, %c0_1, %c0_2] : memref<2x1x16x32xbf16, #tpu.memory_space<vmem>>, vector<2x1x16x32xbf16>
    %1 = vector.shape_cast %0 : vector<2x1x16x32xbf16> to vector<2x16x32xbf16>
    %2 = vector.shape_cast %1 : vector<2x16x32xbf16> to vector<32x32xbf16>
    %c0_3 = arith.constant 0 : index
    %c0_4 = arith.constant 0 : index
    %c0_5 = arith.constant 0 : index
    %c0_6 = arith.constant 0 : index
    %3 = vector.load %arg4[%c0_3, %c0_4, %c0_5, %c0_6] : memref<2x1x16x32xbf16, #tpu.memory_space<vmem>>, vector<2x1x16x32xbf16>
    %4 = vector.shape_cast %3 : vector<2x1x16x32xbf16> to vector<2x16x32xbf16>
    %5 = vector.shape_cast %4 : vector<2x16x32xbf16> to vector<32x32xbf16>
    %c0_7 = arith.constant 0 : index
    %c0_8 = arith.constant 0 : index
    %c0_9 = arith.constant 0 : index
    %c0_10 = arith.constant 0 : index
    %6 = vector.load %arg2[%c0_7, %c0_8, %c0_9, %c0_10] : memref<2x1x16x32xbf16, #tpu.memory_space<vmem>>, vector<2x1x16x32xbf16>
    %7 = vector.shape_cast %6 : vector<2x1x16x32xbf16> to vector<2x16x32xbf16>
    %8 = vector.shape_cast %7 : vector<2x16x32xbf16> to vector<32x32xbf16>
    %cst = arith.constant 0.000000e+00 : bf16
    %9 = vector.broadcast %cst : bf16 to vector<32x32xbf16>
    %c2_i32 = arith.constant 2 : i32
    %10 = arith.cmpi slt, %arg1, %c2_i32 : i32
    %11 = arith.select %10, %5, %9 : vector<32x32xbf16>
    %c0_i32 = arith.constant 0 : i32
    %12 = arith.cmpi sgt, %arg1, %c0_i32 : i32
    %13 = arith.select %12, %8, %9 : vector<32x32xbf16>
    %14 = tpu.iota {dimensions = array<i32: 1>} : vector<32x32xi32>
    %c4_i32 = arith.constant 4 : i32
    %15 = vector.broadcast %c4_i32 : i32 to vector<32x32xi32>
    %16 = arith.cmpi slt, %14, %15 : vector<32x32xi32>
    %c8_i32 = arith.constant 8 : i32
    %17 = vector.broadcast %c8_i32 : i32 to vector<32x32xi32>
    %18 = arith.cmpi slt, %14, %17 : vector<32x32xi32>
    %19 = arith.select %18, %13, %2 : vector<32x32xi1>, vector<32x32xbf16>
    %20 = arith.select %16, %11, %19 : vector<32x32xi1>, vector<32x32xbf16>
    %c0_11 = arith.constant 0 : index
    %c0_12 = arith.constant 0 : index
    %21 = vector.load %arg5[%c0_11, %c0_12] : memref<32x32xbf16, #tpu.memory_space<vmem>>, vector<32x32xbf16>
    %cst_13 = arith.constant dense<0.000000e+00> : vector<32x32xf32>
    %22 = tpu.matmul %20, %21, %cst_13 {dimension_numbers = #tpu.dot_dimension_numbers<[1], [0], [0], [1], [0, 0, 1, 1], [], []>} : vector<32x32xbf16>, vector<32x32xbf16>, vector<32x32xf32> -> vector<32x32xf32>
    %c0_14 = arith.constant 0 : index
    %c0_15 = arith.constant 0 : index
    %23 = vector.load %arg6[%c0_14, %c0_15] : memref<1x32xf32, #tpu.memory_space<vmem>>, vector<1x32xf32>
    %24 = vector.broadcast %23 : vector<1x32xf32> to vector<32x32xf32>
    %25 = arith.addf %22, %24 : vector<32x32xf32>
    %26 = vector.shape_cast %25 : vector<32x32xf32> to vector<2x16x32xf32>
    %c0_16 = arith.constant 0 : index
    %c0_17 = arith.constant 0 : index
    %c0_18 = arith.constant 0 : index
    %c0_19 = arith.constant 0 : index
    %27 = vector.load %arg7[%c0_16, %c0_17, %c0_18, %c0_19] : memref<2x1x16x32xf32, #tpu.memory_space<vmem>>, vector<2x1x16x32xf32>
    %28 = vector.shape_cast %27 : vector<2x1x16x32xf32> to vector<2x16x32xf32>
    %29 = vector.shape_cast %26 : vector<2x16x32xf32> to vector<2x1x16x32xf32>
    tpu.vector_store %arg7[%c0_16, %c0_17, %c0_18, %c0_19], %29 {strides = array<i32>} : memref<2x1x16x32xf32, #tpu.memory_space<vmem>>, vector<2x1x16x32xf32>,
    return
  }
  func.func @transform_0(%arg0: i32, %arg1: i32) -> (i32, i32, i32, i32) {
    %c1_i32 = arith.constant 1 : i32
    %0 = arith.subi %arg1, %c1_i32 : i32
    %c0_i32 = arith.constant 0 : i32
    %1 = arith.maxsi %0, %c0_i32 : i32
    %c0_i32_0 = arith.constant 0 : i32
    %c0_i32_1 = arith.constant 0 : i32
    %c0_i32_2 = arith.constant 0 : i32
    return %arg0, %1, %c0_i32_0, %c0_i32_1 : i32, i32, i32, i32
  }
  func.func @transform_1(%arg0: i32, %arg1: i32) -> (i32, i32, i32, i32) {
    %c0_i32 = arith.constant 0 : i32
    %c0_i32_0 = arith.constant 0 : i32
    %c0_i32_1 = arith.constant 0 : i32
    return %arg0, %arg1, %c0_i32, %c0_i32_0 : i32, i32, i32, i32
  }
  func.func @transform_2(%arg0: i32, %arg1: i32) -> (i32, i32, i32, i32) {
    %c1_i32 = arith.constant 1 : i32
    %0 = arith.addi %arg1, %c1_i32 : i32
    %c2_i32 = arith.constant 2 : i32
    %1 = arith.minsi %0, %c2_i32 : i32
    %c0_i32 = arith.constant 0 : i32
    %c0_i32_0 = arith.constant 0 : i32
    %c0_i32_1 = arith.constant 0 : i32
    return %arg0, %1, %c0_i32, %c0_i32_0 : i32, i32, i32, i32
  }
  func.func @transform_3(%arg0: i32, %arg1: i32) -> (i32, i32) {
    %c0_i32 = arith.constant 0 : i32
    %c0_i32_0 = arith.constant 0 : i32
    %c0_i32_1 = arith.constant 0 : i32
    return %c0_i32, %c0_i32_0 : i32, i32
  }
  func.func @transform_4(%arg0: i32, %arg1: i32) -> (i32, i32) {
    %c0_i32 = arith.constant 0 : i32
    %c0_i32_0 = arith.constant 0 : i32
    %c0_i32_1 = arith.constant 0 : i32
    return %c0_i32, %c0_i32_0 : i32, i32
  }
  func.func @transform_5(%arg0: i32, %arg1: i32) -> (i32, i32, i32, i32) {
    %c0_i32 = arith.constant 0 : i32
    %c0_i32_0 = arith.constant 0 : i32
    %c0_i32_1 = arith.constant 0 : i32
    return %arg0, %arg1, %c0_i32, %c0_i32_0 : i32, i32, i32, i32
  }
}

</mosaic_0001>

<bundles_post_ra>
// kernel: tpu_custom_call.1
= control target key start
LH: loop header
LB: loop body
LE: loop exit
PB: predicated region body
PF: predicated region fallthrough
CT: control target
= control target key end

     0   :  { %s1651_s0 = inlined_call_operand.hbm [shape: bf16[2,3,16,32], index: 0, kind: input, shape index: {}]   ;;  %s1652_s1 = inlined_call_operand.hbm [shape: bf16[2,3,16,32], index: 1, kind: input, shape index: {}]   ;;  %s1653_s2 = inlined_call_operand.hbm [shape: bf16[2,3,16,32], index: 2, kind: input, shape index: {}]   ;;  %s1654_s3 = inlined_call_operand.hbm [shape: bf16[32,32], index: 3, kind: input, shape index: {}]   ;;  %s1655_s4 = inlined_call_operand.vmem [shape: f32[1,32], index: 4, kind: input, shape index: {}]   ;;  %s1656_s5 = inlined_call_operand.hbm [shape: f32[2,3,16,32], index: 5, kind: output, shape index: {}]  }
   0x1   :  { %1678 = sst [smem:[#allocation38_spill]] %s1654_s3 }
   0x2   :  { %1679 = sst [smem:[#allocation39_spill]] %s1655_s4 }
   0x3   :  { %1680 = sst [smem:[#allocation40_spill]] %s1656_s5 }
   0x4   :  { %10 = vsyncpa [#allocation3], 0 }
   0x5   :  { %12 = vsyncpa [#allocation3 + $0x1], 0 }
   0x6   :  { %13 = vsyncpa [#allocation6], 0 }
   0x7   :  { %15 = vsyncpa [#allocation6 + $0x1], 0 }
   0x8   :  { %16 = vsyncpa [#allocation9], 0 }
   0x9   :  { %17 = vsyncpa [#allocation4], 0 }
   0xa   :  { %19 = vsyncpa [#allocation4 + $0x1], 0  ;;  %s1230_s18 = smov 0   ;;  %s1232_s19 = smov 0  }
   0xb   :  { %s1234_s20 = smov 0   ;;  %s1236_s21 = smov 0  }
   0xc   :  { %s1238_s22 = smov 0   ;;  %s1240_s23 = smov 0  }
   0xd   :  { %s1242_s24 = smov 0   ;;  %s1244_s25 = smov 0  }
   0xe   :  { %s1246_s26 = smov 0   ;;  %s1248_s27 = smov 0  }
   0xf   :  { %s1250_s28 = smov 0   ;;  %s1252_s29 = smov 0  }
  0x10 LB: > { %1681 = sst [smem:[#allocation27_spill]] %s1130_s19  ;;  %s1289_s30 = sadd.s32 4294967295, %s1170_s29   ;;  %s1170_s29 = sphi %s1252_s29, %s25_s29   ;;  %s1166_s28 = sphi %s1250_s28, %s1748_s28   ;;  %s1162_s27 = sphi %s1248_s27, %s1747_s27   ;;  %s1158_s26 = sphi %s1246_s26, %s1738_s26   ;;  %s1154_s25 = sphi %s1244_s25, %s1746_s25   ;;  %s1150_s24 = sphi %s1242_s24, %s1745_s24   ;;  %s1146_s23 = sphi %s1240_s23, %s1744_s23   ;;  %s1142_s22 = sphi %s1238_s22, %s1743_s22   ;;  %s1138_s21 = sphi %s1236_s21, %s1742_s21   ;;  %s1134_s20 = sphi %s1234_s20, %s1741_s20   ;;  %s1130_s19 = sphi %s1232_s19, %s1740_s19   ;;  %s1126_s18 = sphi %s1230_s18, %s1734_s18  }
  0x11   : > { %1682 = sst [smem:[#allocation28_spill]] %s1138_s21  ;;  %s34_s7 = sadd.s32 1, %s1166_s28 }
  0x12   : > { %1683 = sst [smem:[#allocation29_spill]] %s1158_s26  ;;  %s797_s8 = sadd.s32 4294967295, %s1166_s28 }
  0x13   : > { %1684 = sst [smem:[#allocation30_spill]] %s1162_s27  ;;  %p35_p0 = scmp.ge.s32.totalorder %s34_s7, 3 }
  0x14   : > { %p42_p1 = scmp.gt.s32.totalorder %s797_s8, 0  ;;  %s52_s9 = sadd.s32 1, %s1158_s26 }
  0x15   : > { %p59_p2 = scmp.ne.s32.totalorder %s1158_s26, %s1154_s25  ;;  %p60_p3 = scmp.eq.s32.totalorder %s1170_s29, 0 }
  0x16   : > { %s1297_s10 = scalar_select %p35_p0, 0, %s34_s7  }
  0x17   : > { %s1750_s8 = smov (!%p42_p1, %s797_s8), 0  ;;  %p65_p5 = scmp.ne.s32.totalorder %s1154_s25, %s1150_s24 }
  0x18   : > { %1685 = sst [smem:[#allocation31_spill]] %s1297_s10  ;;  %s798_s11 = sadd.s32 4294967295, %s1297_s10 }
  0x19   : > { %p45_p4 = scmp.gt.s32.totalorder %s798_s11, 0  ;;  %p1306_p6 = por %p60_p3, %p59_p2 }
  0x1a   : > { %p1662_p7 = scmp.eq.s32.totalorder %s1289_s30, 0  ;;  %s76_s14 = ssub.s32 %s1166_s28, %s1297_s10 }
  0x1b   : > { %s1686_s12 = scalar_select %p1306_p6, 1, 0 }
  0x1c   : > { %s1752_s11 = smov (!%p45_p4, %s798_s11), 0  ;;  %p1313_p8 = por %p1662_p7, %p65_p5 }
  0x1d   : > { %s48_s15 = ssub.s32 %s1750_s8, %s1752_s11  ;;  %p78_p9 = scmp.eq.s32.totalorder %s76_s14, 0 }
  0x1e   : > { %s1687_s13 = scalar_select %p1313_p8, 1, 0 }
  0x1f   : > { %p50_p10 = scmp.eq.s32.totalorder %s48_s15, 0  ;;  %s80_s16 = sadd.s32 1, %s1146_s23 }
  0x20   : > { %s1322_s17 = scalar_select %p78_p9, %s1146_s23, %s80_s16  }
  0x21   : > { %s1325_s24 = scalar_select %p50_p10, %s1158_s26, %s52_s9  }
  0x22   : > { %1688 = sst [smem:[#allocation32_spill]] %s1322_s17  ;;  %p1659_p11 = scmp.ne.s32.totalorder %s1146_s23, %s1142_s22 }
  0x23   : > { %1689 = sst [smem:[#allocation33_spill]] %s1325_s24  ;;  %p1658_p12 = scmp.ne.s32.totalorder %s1142_s22, %s1138_s21 }
  0x24   : > { %p104_p13 = scmp.lt.s32.totalorder %s34_s7, 2  ;;  %s106_s6 = sadd.s32 1, %s1297_s10 }
  0x25   : > { %p1337_p0 = por %p1659_p11, %p60_p3  ;;  %p1346_p1 = por %p1658_p12, %p1662_p7 }
  0x26   : > { %s1754_s7 = smov (!%p104_p13, %s34_s7), 2  ;;  %p107_p2 = scmp.lt.s32.totalorder %s106_s6, 2 }
  0x27   : > { %s1690_s11 = scalar_select %p1337_p0, 1, 0 }
  0x28   : > { %s1691_s9 = scalar_select %p1346_p1, 1, 0 }
  0x29   : > { %s114_s14 = sadd.s32 1, %s1134_s20  ;;  %p121_p4 = scmp.ne.s32.totalorder %s1134_s20, %s1130_s19 }
  0x2a   : > { %p127_p5 = scmp.ne.s32.totalorder %s1130_s19, %s1126_s18  ;;  %s1756_s6 = smov (!%p107_p2, %s106_s6), 2 }
  0x2b   : > { %p1359_p9 = por %p121_p4, %p60_p3  ;;  %s110_s10 = ssub.s32 %s1754_s7, %s1756_s6 }
  0x2c   : > { %p1365_p10 = por %p127_p5, %p1662_p7  ;;  %p195_p13 = scmp.eq.s32.totalorder %s1289_s30, 2 }
  0x2d   : > { %s1692_s15 = scalar_select %p1359_p9, 1, 0 }
  0x2e   : > { %s1693_s16 = scalar_select %p1365_p10, 1, 0 }
  0x2f   : > { %p112_p12 = scmp.eq.s32.totalorder %s110_s10, 0  ;;  %s1695_s24 = sadd.s32 4294967294, %s1170_s29  }
  0x30   : > { %1694 = sst [smem:[#allocation34_spill]] %s1693_s16  ;;  %p201_p11 = scmp.eq.s32.totalorder %s1695_s24, 2 }
  0x31   : > { %p1696_p1 = scmp.ne.s32.totalorder %s1146_s23, %s1142_s22  ;;  %p799_p3 = scmp.ge.s32.totalorder %s1170_s29, 1 }
  0x32   : > { %s1382_s17 = scalar_select %p112_p12, %s1134_s20, %s114_s14  }
  0x33   : > { %p1376_p8 = por %p195_p13, %p1696_p1  ;;  %p1700_p2 = scmp.ne.s32.totalorder %s1142_s22, %s1138_s21 }
  0x34   : > { %1699 = sst [smem:[#allocation36_spill]] %s1382_s17  ;;  %p208_p5 = scmp.lt.s32.totalorder %s1170_s29, 4 }
  0x35   : > { %s1697_s18 = scalar_select %p1376_p8, 1, 0 }
  0x36   : > { %p1387_p4 = por %p201_p11, %p1700_p2  ;;  %p1392_p7 = pnand %p799_p3, %p208_p5 }
  0x37   : > { %1698 = sst [smem:[#allocation35_spill]] %s1697_s18  ;;  %s1172_s10 = smov [#allocation8]  }
  0x38   : > { %s1701_s5 = scalar_select %p1387_p4, 1, 0 }
  0x39   : > { %s1703_s6 = scalar_select %p1392_p7, 1, 0 }
  0x3a   : > { %1702 = sst [smem:[#allocation37_spill]] %s1701_s5  ;;  %s220_s24 = sshll.u32 %s1172_s10, 4  ;;  %s221_s24 = int_to_ptr.vmem [resolvable:$true] %s220_s24 }
  0x3b   : > { %p891_p1 = pneg %p1392_p7  ;;  %p1704_p13 = scmp.eq.s32.totalorder %s1289_s30, 0 }
  0x3c   : > { %s1706_s3 = sld [smem:[#allocation38_spill]] }
  0x3d   : > { %p1400_p8 = pnand %p891_p1, %p1704_p13 }
  0x3f   : > { %p1030_p12 = pneg %p1400_p8 }
  0x42   : > { %s1028_s5 = scalar_lea.hbm %s1706_s3, 256 }
  0x43   : > { %p1029_p11 = scmp.ne.s32.totalorder %s1706_s3, %s1028_s5  ;;  %p1035_p5 = scmp.lt.u32.totalorder %s1028_s5, %s1706_s3 }
  0x45   : > { %p1031_p3 = pnand %p1030_p12, %p1029_p11 }
  0x47   : > { %p1032_p2 = pneg %p1031_p3 }
  0x49   : > { %p1037_p1 = pnand %p1035_p5, %p1032_p2 }
  0x4b   : > { %1040 = shalt.err (!%p1037_p1)
}
  0x4c   : > { %s1041_s16 = scalar_lea.vmem %s221_s24, 256  ;;  %p1049_p7 = scmp.lt.s32.totalorder %s221_s24, %s221_s24 }
  0x4d   : > { %p1042_p13 = scmp.ne.s32.totalorder %s221_s24, %s1041_s16  ;;  %p1050_p9 = scmp.lt.s32.totalorder %s1041_s16, %s1041_s16 }
  0x4f   : > { %p1044_p4 = pnand %p1042_p13, %p1030_p12  ;;  %p1051_p0 = por %p1050_p9, %p1049_p7 }
  0x51   : > { %p1045_p10 = pneg %p1044_p4 }
  0x53   : > { %p1052_p6 = pnand %p1051_p0, %p1045_p10 }
  0x55   : > { %1055 = shalt.err (!%p1052_p6)
}
  0x56   : > { %s1173_s4 = smov 64   ;;  %s1174_s21 = smov 4  }
  0x57   : > { %894 = dma.hbm_to_vmem [thread:$0]  (!%p1400_p8), %s1706_s3, 256, %s221_s24, [#allocation9], %s1173_s4, %s1173_s4, %s1174_s21  }
  0x58   : > { %p801_p11 = scmp.ge.s32.totalorder %s1170_s29, 3 }
  0x5a   : > { %233 = sbr.rel (%p801_p11) target bundleno = 141 (0x8d), region = 24 }
  0x61   : > { %s237_s5 = sand.u32 1, %s1158_s26   ;;  %s836_s27 = sshll.u32 %s1750_s8, 7 }
  0x62   : > { %s802_s16 = sshll.u32 %s237_s5, 4  ;;  %s253_s19 = scalar_lea.hbm %s1651_s0, %s836_s27 }
  0x63   : > { %p1707_p6 = scmp.ne.s32.totalorder %s1686_s12, 0  ;;  %s241_s4 = scalar_lea.vmem [#allocation2], %s802_s16 }
  0x64   : > { %s266_s21 = sshll.u32 %s241_s4, 4  ;;  %s1175_s18 = smov 384   ;;  %s267_s21 = int_to_ptr.vmem [resolvable:$true] %s266_s21 }
  0x65   : > { %s854_s24 = scalar_select %p1707_p6, [#allocation0], [#allocation19] }
  0x66   : > { %855 = sst [smem:[#allocation12]] (%p1707_p6), %s1175_s18  ;;  %s1176_s3 = smov 128  }
  0x67   : > { %s258_s17 = sld [smem:[%s854_s24]]   ;;  %s1177_s8 = smov 2  }
  0x68   : > { %856 = sst [smem:[#allocation12 + $0x1]] (%p1707_p6), %s1176_s3  ;;  %s1178_s26 = smov 64  }
  0x69   : > { %857 = sst [smem:[#allocation12 + $0x2]] (%p1707_p6), %s1177_s8  ;;  %s1179_s16 = smov 4  }
  0x6a   : > { %858 = sst [smem:[#allocation12 + $0x3]] (%p1707_p6), %s1178_s26  ;;  %s238_s14 = scalar_lea.sflag [#allocation3], %s237_s5 }
  0x6b   : > { %859 = sst [smem:[#allocation12 + $0x4]] (%p1707_p6), %s1178_s26  ;;  %s1180_s24 = smov [#allocation11]  }
  0x6c   : > { %860 = sst [smem:[#allocation12 + $0x5]] (%p1707_p6), %s1179_s16 }
  0x6d   : > { %s806_s27 = sshll.u32 %s258_s17, 26 }
  0x6e   : > { %s807_s10 = sadd.s32 134217728, %s806_s27 }
  0x6f   : > { %861 = dma.general (%p1707_p6), %s253_s19, 256, %s267_s21, %s238_s14, %s1180_s24, [#allocation12], %s807_s10, 0  }
  0x70   : > { %s289_s3 = sand.u32 1, %s1170_s29   ;;  %s291_s4 = sand.u32 1, %s1146_s23  }
  0x71   : > { %s808_s26 = sshll.u32 %s291_s4, 4  ;;  %s837_s17 = sshll.u32 %s1166_s28, 7 }
  0x72   : > { %s302_s5 = scalar_lea.hbm %s1652_s1, %s837_s17  ;;  %p1708_p7 = scmp.ne.s32.totalorder %s1690_s11, 0 }
  0x73   : > { %s293_s19 = scalar_lea.vmem [#allocation5], %s808_s26  ;;  %s1181_s16 = smov 384  }
  0x74   : > { %s862_s12 = scalar_select %p1708_p7, [#allocation0], [#allocation20] }
  0x75   : > { %s315_s21 = sshll.u32 %s293_s19, 4  ;;  %863 = sst [smem:[#allocation14]] (%p1708_p7), %s1181_s16  ;;  %s316_s21 = int_to_ptr.vmem [resolvable:$true] %s315_s21 }
  0x76   : > { %s307_s27 = sld [smem:[%s862_s12]]   ;;  %s1182_s10 = smov 128  }
  0x77   : > { %864 = sst [smem:[#allocation14 + $0x1]] (%p1708_p7), %s1182_s10  ;;  %s1183_s14 = smov 2  }
  0x78   : > { %865 = sst [smem:[#allocation14 + $0x2]] (%p1708_p7), %s1183_s14  ;;  %s1184_s24 = smov 64  }
  0x79   : > { %866 = sst [smem:[#allocation14 + $0x3]] (%p1708_p7), %s1184_s24  ;;  %s1185_s26 = smov 4  }
  0x7a   : > { %867 = sst [smem:[#allocation14 + $0x4]] (%p1708_p7), %s1184_s24  ;;  %s1462_s18 = scalar_lea.sflag [#allocation6], %s289_s3 }
  0x7b   : > { %868 = sst [smem:[#allocation14 + $0x5]] (%p1708_p7), %s1185_s26  ;;  %s1186_s8 = smov [#allocation13]  }
  0x7c   : > { %s811_s4 = sshll.u32 %s307_s27, 26 }
  0x7d   : > { %s812_s17 = sadd.s32 134217728, %s811_s4 }
  0x7e   : > { %869 = dma.general (%p1708_p7), %s302_s5, 256, %s316_s21, %s1462_s18, %s1186_s8, [#allocation14], %s812_s17, 0  }
  0x7f   : > { %s340_s12 = sand.u32 1, %s1134_s20   ;;  %s838_s27 = sshll.u32 %s1754_s7, 7 }
  0x80   : > { %s813_s19 = sshll.u32 %s340_s12, 4  ;;  %p1709_p8 = scmp.ne.s32.totalorder %s1692_s15, 0 }
  0x81   : > { %s354_s14 = scalar_lea.hbm %s1653_s2, %s838_s27  ;;  %s1187_s11 = smov 384  }
  0x82   : > { %s870_s16 = scalar_select %p1709_p8, [#allocation0], [#allocation21] }
  0x83   : > { %871 = sst [smem:[#allocation16]] (%p1709_p8), %s1187_s11  ;;  %s342_s21 = scalar_lea.vmem [#allocation7], %s813_s19 }
  0x84   : > { %s359_s5 = sld [smem:[%s870_s16]]   ;;  %s367_s24 = sshll.u32 %s342_s21, 4  ;;  %s368_s24 = int_to_ptr.vmem [resolvable:$true] %s367_s24 }
  0x85   : > { %s1188_s4 = smov 128   ;;  %s1189_s26 = smov 2  }
  0x86   : > { %872 = sst [smem:[#allocation16 + $0x1]] (%p1709_p8), %s1188_s4  ;;  %s1190_s7 = smov 64  }
  0x87   : > { %873 = sst [smem:[#allocation16 + $0x2]] (%p1709_p8), %s1189_s26  ;;  %s1191_s8 = smov 4  }
  0x88   : > { %874 = sst [smem:[#allocation16 + $0x3]] (%p1709_p8), %s1190_s7  ;;  %s1192_s27 = smov [#allocation15]  }
  0x89   : > { %875 = sst [smem:[#allocation16 + $0x4]] (%p1709_p8), %s1190_s7 }
  0x8a   : > { %s816_s17 = sshll.u32 %s359_s5, 26  ;;  %876 = sst [smem:[#allocation16 + $0x5]] (%p1709_p8), %s1191_s8 }
  0x8b   : > { %s817_s12 = sadd.s32 134217728, %s816_s17 }
  0x8c   : > { %877 = dma.general (%p1709_p8), %s354_s14, 256, %s368_s24, %s1462_s18, %s1192_s27, [#allocation16], %s817_s12, 0  }
  0x8d PF: > { %p1710_p0 = scmp.ne.s32.totalorder %s1703_s6, 0 }
  0x8e   : > { %s394_s19 = sand.u32 (!%p1710_p0), 1, %s1154_s25   ;;  %p1711_p9 = scmp.ne.s32.totalorder (!%p1710_p0), %s1687_s13, 0 }
  0x8f   : > { %392 = sbr.rel (%p1710_p0) target bundleno = 421 (0x1a5), region = 40  ;;  %s819_s16 = sshll.u32 (!%p1710_p0), %s394_s19, 4 }
  0x90   : > { %s395_s10 = scalar_lea.sflag (!%p1710_p0), [#allocation3], %s394_s19  ;;  %s1492_s3 = scalar_lea.vmem (!%p1710_p0), [#allocation2], %s819_s16 }
  0x96   : > { %1105 = dma.done.wait (%p1711_p9), %s395_s10, 256  }
  0x97   : > { %1107 = vsyncadd (%p1711_p9), %s395_s10, 4294967040  ;;  %s403_s15 = sand.u32 1, %s1289_s30   ;;  %s1500_s18 = sand.u32 1, %s1142_s22  }
  0x98   : > { %s820_s6 = sshll.u32 %s1500_s18, 4  ;;  %s404_s14 = scalar_lea.sflag [#allocation6], %s403_s15 }
  0x99   : > { %s1503_s11 = scalar_lea.vmem [#allocation5], %s820_s6  ;;  %p1712_p10 = scmp.ne.s32.totalorder %s1691_s9, 0 }
  0x9b   : > { %1109 = dma.done.wait (%p1712_p10), %s404_s14, 256  }
  0x9c   : > { %1111 = vsyncadd (%p1712_p10), %s404_s14, 4294967040  ;;  %s1713_s5 = sld [smem:[#allocation27_spill]] }
  0x9d   : > { %s1714_s21 = sld [smem:[#allocation34_spill]] }
  0xa2   : > { %s414_s13 = sand.u32 1, %s1713_s5  }
  0xa3   : > { %s821_s24 = sshll.u32 %s414_s13, 4  ;;  %p1715_p4 = scmp.ne.s32.totalorder %s1714_s21, 0 }
  0xa4   : > { %s1510_s4 = scalar_lea.vmem [#allocation7], %s821_s24 }
  0xa5   : > { %1113 = dma.done.wait (%p1715_p4), %s404_s14, 256  }
  0xa6   : > { %1115 = vsyncadd (%p1715_p4), %s404_s14, 4294967040  ;;  %p1716_p12 = scmp.eq.s32.totalorder %s1289_s30, 0 }
  0xa8   : > { %1117 = dma.done.wait (%p1716_p12), [#allocation9], 256   ;;  %p1717_p3 = pmov %p1716_p12 }
  0xa9   : > { %s1718_s26 = sld [smem:[#allocation30_spill]]  ;;  %v496_v0 = vlaneseq  ;;  %vm543_vm4 = vcmask 261120   ;;  %v1026_v6 = vld [vmem:[#allocation8] sm:$0xff]   ;;  %v1027_v8 = vld [vmem:[#allocation8 + $0x8] sm:$0xff]   ;;  %s823_s30 = sshll.u32 %s1500_s18, 5 }
  0xaa   : > { %1119 = vsyncadd (%p1717_p3), [#allocation9], 4294967040  ;;  %844 = vmatprep.subr.bf16.mxu0 %v1026_v6  ;;  %v468_v10 = vld [vmem:[%s1503_s11] sm:$0xf]  ;;  %v469_v11 = vld [vmem:[%s1503_s11 + $0x4] sm:$0xf] }
  0xab   : > { %v497_v1 = vand.u32 127, %v496_v0  ;;  %v472_v12 = vld [vmem:[%s1510_s4] sm:$0xf]  ;;  %845 = vmatpush3.bf16.msra.mxu0 %v1026_v6  ;;  %v473_v13 = vld [vmem:[%s1510_s4 + $0x4] sm:$0xf]  ;;  %s1727_s12 = sld [smem:[#allocation39_spill]] }
  0xac   : > { %v476_v14 = vld [vmem:[%s1492_s3] sm:$0xf]  ;;  %v477_v15 = vld [vmem:[%s1492_s3 + $0x4] sm:$0xf]  ;;  %846 = vmatprep.subr.bf16.mxu0 %v1027_v8  ;;  %v470_v20 = vld [vmem:[%s1503_s11 + $0x8] sm:$0xf] }
  0xad   : > { %vm498_vm0 = vcmp.lt.s32.totalorder %v497_v1, 4  ;;  %vm499_vm1 = vcmp.lt.s32.totalorder %v497_v1, 8  ;;  %v471_v23 = vld [vmem:[%s1503_s11 + $0xc] sm:$0xf]  ;;  %v474_v24 = vld [vmem:[%s1510_s4 + $0x8] sm:$0xf] }
  0xae   : > { %vm1522_vm2 = vmpackc.low %vm499_vm1, %vm499_vm1  ;;  %v475_v25 = vld [vmem:[%s1510_s4 + $0xc] sm:$0xf]  ;;  %v478_v28 = vld [vmem:[%s1492_s3 + $0x8] sm:$0xf]  ;;  %s456_s27 = scalar_lea.vmem [#allocation10], %s823_s30  ;;  %s604_s19 = scalar_lea.sflag [#allocation4], %s1500_s18 }
  0xaf   : > { %p480_p2 = scmp.lt.s32.totalorder %s1718_s26, 2  ;;  %p488_p5 = scmp.gt.s32.totalorder %s1718_s26, 0  ;;  %vm1526_vm3 = vmpackc.low %vm498_vm0, %vm498_vm0  ;;  %v479_v29 = vld [vmem:[%s1492_s3 + $0xc] sm:$0xf]  ;;  %847 = vmatpush3.bf16.msra.mxu0 %v1027_v8 }
  0xb1   : > { %s481_s9 = scalar_select %p480_p2, 1, 0  ;;  %v824_v40 = vld [vmem:[%s1727_s12] ss:$0 sm:$0xff] }
  0xb2   : > { %s489_s7 = scalar_select %p488_p5, 1, 0 }
  0xb3   : > { %v482_v2 = vstv %s481_s9 }
  0xb4   : > { %v490_v3 = vstv %s489_s7  ;;  %vm1530_vm5 = vcmp.eq.s32.totalorder %v482_v2, 1 }
  0xb5   : > { %vm1534_vm6 = vcmp.eq.s32.totalorder %v490_v3, 1  ;;  %v484_v16 = vsel %vm1530_vm5, %v472_v12, 0  ;;  %v485_v17 = vsel %vm1530_vm5, %v473_v13, 0  ;;  %v486_v30 = vsel %vm1530_vm5, %v474_v24, 0 }
  0xb6   : > { %v492_v18 = vsel %vm1534_vm6, %v476_v14, 0  ;;  %v493_v19 = vsel %vm1534_vm6, %v477_v15, 0  ;;  %v487_v31 = vsel %vm1530_vm5, %v475_v25, 0  ;;  %v494_v33 = vsel %vm1534_vm6, %v478_v28, 0 }
  0xb7   : > { %v501_v21 = vsel %vm1522_vm2, %v492_v18, %v468_v10  ;;  %v502_v22 = vsel %vm1522_vm2, %v493_v19, %v469_v11  ;;  %v495_v34 = vsel %vm1534_vm6, %v479_v29, 0  ;;  %v503_v35 = vsel %vm1522_vm2, %v494_v33, %v470_v20 }
  0xb8   : > { %v506_v26 = vsel %vm1526_vm3, %v484_v16, %v501_v21  ;;  %v507_v27 = vsel %vm1526_vm3, %v485_v17, %v502_v22  ;;  %v504_v36 = vsel %vm1522_vm2, %v495_v34, %v471_v23  ;;  %v508_v37 = vsel %vm1526_vm3, %v486_v30, %v503_v35 }
  0xb9   : > { %v825_v32 = vcombine.low %v506_v26, %v507_v27  ;;  %v509_v38 = vsel %vm1526_vm3, %v487_v31, %v504_v36 }
  0xba   : > { %v826_v39 = vcombine.low %v508_v37, %v509_v38 }
  0xbb   : > { %848 = vmatprep.mubr.msk.bf16.mxu0 %vm543_vm4, %v825_v32 }
  0xbc   : > { %849 = vmatmul.mubr.msk.bf16.vlgmr.msra.gmra.mrb[0].mxu0 %vm543_vm4, %v826_v39 }
 0x18f   : > { %v850_v41 = vpop.f32.mrb[0].mxu0 }
 0x190   : > { %v593_v42 = vadd.f32 %v850_v41, %v824_v40  ;;  %v584_v43 = vpop.f32.mrb[1].mxu0 }
 0x191   : > { %v585_v44 = vadd.f32 %v824_v40, %v584_v43  ;;  %v851_v45 = vpop.f32.mrb[2].mxu0 }
 0x192   : > { %601 = vst.msk [vmem:[%s456_s27 + $0x10] sm:$0xff] %vm543_vm4, %v593_v42  ;;  %v596_v46 = vadd.f32 %v851_v45, %v824_v40  ;;  %v587_v47 = vpop.f32.mrb[3].mxu0 }
 0x193   : > { %599 = vst.msk [vmem:[%s456_s27] sm:$0xff] %vm543_vm4, %v585_v44  ;;  %v588_v48 = vadd.f32 %v824_v40, %v587_v47 }
 0x194   : > { %602 = vst.msk [vmem:[%s456_s27 + $0x18] sm:$0xff] %vm543_vm4, %v596_v46 }
 0x195   : > { %600 = vst.msk [vmem:[%s456_s27 + $0x8] sm:$0xff] %vm543_vm4, %v588_v48 }
 0x196   : > { %s1728_s16 = sld [smem:[#allocation35_spill]]  ;;  %s839_s10 = sshll.u32 %s1718_s26, 8 }
 0x197   : > { %s636_s3 = sshll.u32 %s456_s27, 4  ;;  %s1729_s14 = sld [smem:[#allocation40_spill]]  ;;  %s637_s3 = int_to_ptr.vmem [resolvable:$true] %s636_s3 }
 0x198   : > { %s1193_s5 = smov 256   ;;  %s1194_s21 = smov 768  }
 0x199   : > { %s1195_s18 = smov 2   ;;  %s1196_s13 = smov 128  }
 0x19a   : > { %s1197_s24 = smov 8   ;;  %s1198_s4 = smov [#allocation17]  }
 0x19b   : > { %s1199_s26 = smov 0  }
 0x19c   : > { %p1730_p1 = scmp.ne.s32.totalorder %s1728_s16, 0 }
 0x19d   : > { %s619_s11 = scalar_lea.hbm %s1729_s14, %s839_s10 }
 0x19e   : > { %883 = sst [smem:[#allocation18]] (%p1730_p1), %s1193_s5 }
 0x19f   : > { %884 = sst [smem:[#allocation18 + $0x1]] (%p1730_p1), %s1194_s21 }
 0x1a0   : > { %885 = sst [smem:[#allocation18 + $0x2]] (%p1730_p1), %s1195_s18 }
 0x1a1   : > { %886 = sst [smem:[#allocation18 + $0x3]] (%p1730_p1), %s1196_s13 }
 0x1a2   : > { %887 = sst [smem:[#allocation18 + $0x4]] (%p1730_p1), %s1196_s13 }
 0x1a3   : > { %888 = sst [smem:[#allocation18 + $0x5]] (%p1730_p1), %s1197_s24 }
 0x1a4   : > { %889 = dma.general (%p1730_p1), %s637_s3, 512, %s619_s11, %s604_s19, %s1198_s4, [#allocation18], %s1199_s26, 0  }
 0x1a5 PF: > { %s1731_s9 = sld [smem:[#allocation28_spill]]  ;;  %s1732_s7 = sld [smem:[#allocation37_spill]] }
 0x1a6   : > { %p901_p13 = scmp.ge.s32.totalorder %s1170_s29, 2 }
 0x1ab   : > { %s664_s30 = sand.u32 1, %s1731_s9   ;;  %p1733_p11 = scmp.ne.s32.totalorder %s1732_s7, 0 }
 0x1ac   : > { %s665_s17 = scalar_lea.sflag [#allocation4], %s664_s30 }
 0x1ad   : > { %p896_p6 = pnand %p901_p13, %p1733_p11 }
 0x1af   : > { %1121 = dma.done.wait (!%p896_p6), %s665_s17, 512  }
 0x1b0   : > { %1123 = vsyncadd (!%p896_p6), %s665_s17, 4294966784  ;;  %s25_s29 = sadd.s32 1, %s1170_s29   ;;  %s1734_s18 = sld [smem:[#allocation27_spill]] }
 0x1b1   : > { %p22_p7 = scmp.ge.s32.totalorder %s25_s29, 5   ;;  %s1735_s8 = sld [smem:[#allocation36_spill]] }
 0x1b2   : > { %s1736_s12 = sld [smem:[#allocation32_spill]]  ;;  %s1737_s27 = sld [smem:[#allocation29_spill]] }
 0x1b3   : > { %s1738_s26 = sld [smem:[#allocation33_spill]]  ;;  %s1739_s16 = sld [smem:[#allocation31_spill]] }
 0x1b4   : > { %s1740_s19 = smov %s1134_s20  ;;  %s1742_s21 = smov %s1142_s22 }
 0x1b5   : > { %s1743_s22 = smov %s1146_s23  ;;  %s1745_s24 = smov %s1154_s25 }
 0x1b6   :  { %24 = sbr.rel (!%p22_p7) target bundleno = 16 (0x10), region = 133 }
 0x1b7   : > { %s1741_s20 = smov %s1735_s8 }
 0x1b8   : > { %s1744_s23 = smov %s1736_s12  ;;  %s1746_s25 = smov %s1737_s27 }
 0x1b9   : > { %s1747_s27 = smov %s1166_s28  ;;  %s1748_s28 = smov %s1739_s16 }
 0x1bd   :  { %670 = vsyncpa [#allocation3], 1 }
 0x1be   :  { %672 = vsyncpa [#allocation3 + $0x1], 1 }
 0x1bf   :  { %673 = vsyncpa [#allocation6], 1 }
 0x1c0   :  { %675 = vsyncpa [#allocation6 + $0x1], 1 }
 0x1c1   :  { %676 = vsyncpa [#allocation9], 1 }
 0x1c2   :  { %677 = vsyncpa [#allocation4], 1 }
 0x1c3   :  { %679 = vsyncpa [#allocation4 + $0x1], 1 }

</bundles_post_ra>
